<compile_context>
chip_gen: v6e
topology: v6e:2x2x1
jax: 0.10.0
libtpu: 0.0.40
codegen_flags: <defaults>
</compile_context>

<pallas_src>
import functools

import jax
import jax.numpy as jnp
from jax.experimental import pallas as pl
from jax.experimental.pallas import tpu as pltpu


# -----------------------------------------------------------------------------
# Helpers & generation-aware VMEM budgets
# -----------------------------------------------------------------------------
def _round_up(x, m):
    return ((x + m - 1) // m) * m


def _pad2d(a, rows, cols):
    pr = rows - a.shape[0]
    pc = cols - a.shape[1]
    if pr or pc:
        a = jnp.pad(a, ((0, pr), (0, pc)))
    return a


def _tpu_vmem_capacity_bytes():
    try:
        cap = int(pltpu.get_tpu_info().vmem_capacity_bytes)
        if cap > 0:
            return cap
    except Exception:
        pass
    return 64 << 20   # conservative default = v7x per-TensorCore VMEM


_VMEM_CAPACITY = _tpu_vmem_capacity_bytes()
# Scoped-VMEM cap per pallas_call: ~51 MiB on v7x (64 MiB/TC), ~100 MiB on
# v5e/v6e (128 MiB/TC) -- leaves headroom for compiler-internal scratch.
_VMEM_LIMIT_CAP = max(32 << 20, min(_VMEM_CAPACITY - (12 << 20),
                                    int(0.8 * _VMEM_CAPACITY)))
# Total per-step footprint budget for the weight-resident / fused-MLP paths.
# Weights are counted double-buffered, so the plain-spec fallback always fits.
_RESIDENT_BUDGET = int(0.7 * _VMEM_LIMIT_CAP)

_TM_MAX = 512   # 512-row tiles sit near the HBM roofline (~85% vs ~63% at 256)


def _vmem_limit(nbytes):
    return int(min(max(nbytes + (8 << 20), 32 << 20), _VMEM_LIMIT_CAP))


def _sublane(cdtype):
    # bf16 packs 2 rows / sublane -> tm multiples of 16; fp8/int8 would need 32.
    return {1: 32, 2: 16}.get(cdtype.itemsize, 8)


def _choose_tm(M, sub, fits, tm_max=_TM_MAX):
    """Largest row tile (multiple of `sub`, <= tm_max) whose footprint fits."""
    tm = min(tm_max, _round_up(M, sub))
    while tm > sub and not fits(tm):
        tm = max(sub, _round_up(tm // 2, sub))
    if not fits(tm):
        return None
    # Megacore: keep >= 2 row tiles so the ("parallel",) axis can shard across
    # both TensorCores on v7x.
    if pl.cdiv(M, tm) <= 1 and M > 2 * sub:
        tm = min(tm, _round_up(pl.cdiv(M, 2), sub))
    if tm >= M:
        tm = M   # full extent (any size allowed when equal to the array dim)
    return tm


def _linear_footprint(tm, K, n_blk, x_isz, c_isz, o_isz):
    return (2 * tm * K * x_isz                     # double-buffered x row tiles
            + 2 * (K + 1) * n_blk * c_isz          # W + bias (double-buffered)
            + 2 * tm * n_blk * o_isz               # double-buffered output tiles
            + tm * K * c_isz + tm * n_blk * 4)     # in-kernel cast + f32 result


def _mlp_footprint(tm, K, H_pad, N_pad, x_isz, c_isz, o_isz):
    return (2 * tm * K * x_isz
            + 2 * ((K + 1) * H_pad + (H_pad + 1) * N_pad) * c_isz
            + 2 * tm * N_pad * o_isz
            + tm * K * c_isz                       # in-kernel x cast
            + tm * H_pad * (4 + c_isz)             # f32 hidden + cast for matmul 2
            + tm * N_pad * 4)                      # f32 result before store cast


# -----------------------------------------------------------------------------
# Kernel bodies
# -----------------------------------------------------------------------------
def _linear_kernel(x_ref, w_ref, b_ref, o_ref, *, apply_relu, compute_dtype):
    x = x_ref[...]
    if compute_dtype is not None:
        # Cast the activation tile in-kernel (hides under the MXU) instead of a
        # wrapper-side astype, which would cost a full extra HBM pass over x.
        x = x.astype(compute_dtype)
    y = jnp.dot(x, w_ref[...], preferred_element_type=jnp.float32)
    y = y + b_ref[...].astype(jnp.float32)
    if apply_relu:
        y = jnp.maximum(y, 0.0)
    o_ref[...] = y.astype(o_ref.dtype)


def _mlp_kernel(x_ref, w1_ref, b1_ref, w2_ref, b2_ref, o_ref, *, compute_dtype):
    x = x_ref[...]
    if compute_dtype is not None:
        x = x.astype(compute_dtype)
    h = jnp.dot(x, w1_ref[...], preferred_element_type=jnp.float32)
    h = jnp.maximum(h + b1_ref[...].astype(jnp.float32), 0.0)
    y = jnp.dot(h.astype(w2_ref.dtype), w2_ref[...],
                preferred_element_type=jnp.float32)
    o_ref[...] = (y + b2_ref[...].astype(jnp.float32)).astype(o_ref.dtype)


# -----------------------------------------------------------------------------
# pallas_call wrapper for the weight-resident paths
# -----------------------------------------------------------------------------
def _resident_pallas_call(kernel, out_shape, grid, in_defs, out_def, resident_idx,
                          compiler_params, args, *, try_single_buffer):
    """in_defs/out_def: (block_shape, index_map) pairs.  Inputs listed in
    `resident_idx` have grid-invariant index maps (whole weight kept in VMEM);
    when `try_single_buffer`, first attempt pl.Buffered(1) on them to halve the
    resident footprint, and fall back to default double-buffered specs if the
    installed Pallas rejects pipeline_mode."""
    def build(single):
        specs = []
        for n, (shape, imap) in enumerate(in_defs):
            if single and n in resident_idx:
                specs.append(pl.BlockSpec(shape, imap,
                                          pipeline_mode=pl.Buffered(1)))
            else:
                specs.append(pl.BlockSpec(shape, imap))
        return pltpu.PrefetchScalarGridSpec(
            num_scalar_prefetch=0, grid=grid, in_specs=specs,
            out_specs=pl.BlockSpec(*out_def))

    modes = (True, False) if try_single_buffer else (False,)
    for single in modes:
        try:
            return pl.pallas_call(kernel, out_shape=out_shape,
                                  grid_spec=build(single),
                                  compiler_params=compiler_params)(*args)
        except Exception:
            if not single:
                raise
    raise AssertionError("unreachable")


# -----------------------------------------------------------------------------
# Linear: y = x @ W + b (+ optional ReLU)
# -----------------------------------------------------------------------------
def linear_pallas(x2d, w, b, *, apply_relu=False, compute_dtype=None):
    M, K = x2d.shape
    Kw, N = w.shape
    assert K == Kw, (K, Kw)
    out_dtype = x2d.dtype

    # Only the small, constant weights are cast/padded in the wrapper.
    if compute_dtype is not None:
        w = w.astype(compute_dtype)
        b = b.astype(compute_dtype)
    cdtype = w.dtype
    sub = _sublane(cdtype)

    N_pad = _round_up(N, 128)            # lane-dense, unmasked output stores
    w_p = _pad2d(w, K, N_pad)
    b_p = _pad2d(b.reshape(1, N), 1, N_pad)

    x_isz = x2d.dtype.itemsize
    c_isz = cdtype.itemsize
    o_isz = out_dtype.itemsize
    kernel = functools.partial(_linear_kernel, apply_relu=apply_relu,
                               compute_dtype=compute_dtype)

    def fits_resident(tm_):
        return _linear_footprint(tm_, K, N_pad, x_isz, c_isz, o_isz) <= _RESIDENT_BUDGET

    tm = _choose_tm(M, sub, fits_resident)
    if tm is not None:
        # Weight fully VMEM-resident: W streamed from HBM exactly once; grid over
        # row tiles only (no K axis, no accumulator, no pl.when init/finalize).
        fp = _linear_footprint(tm, K, N_pad, x_isz, c_isz, o_isz)
        w_bytes = 2 * (K + 1) * N_pad * c_isz
        out = _resident_pallas_call(
            kernel,
            jax.ShapeDtypeStruct((M, N_pad), out_dtype),
            grid=(pl.cdiv(M, tm),),
            in_defs=[((tm, K), lambda i: (i, 0)),
                     ((K, N_pad), lambda i: (0, 0)),
                     ((1, N_pad), lambda i: (0, 0))],
            out_def=((tm, N_pad), lambda i: (i, 0)),
            resident_idx=(1, 2),
            compiler_params=pltpu.CompilerParams(
                dimension_semantics=("parallel",),
                vmem_limit_bytes=_vmem_limit(fp)),
            args=(x2d, w_p, b_p),
            try_single_buffer=w_bytes > (8 << 20))
    else:
        # Weight too large to keep resident: tile its output columns.  x row
        # tiles stay full-K (still no K grid axis / accumulator and no padding
        # of the activation); W columns are re-streamed once per row tile, but
        # only on this rare huge-weight path.
        tn = min(512, N_pad)

        def fits_tiled(tm_):
            return _linear_footprint(tm_, K, tn, x_isz, c_isz, o_isz) <= _RESIDENT_BUDGET

        tm = _choose_tm(M, sub, fits_tiled) or min(sub, M)
        fp = _linear_footprint(tm, K, tn, x_isz, c_isz, o_isz)
        out = pl.pallas_call(
            kernel,
            out_shape=jax.ShapeDtypeStruct((M, N_pad), out_dtype),
            grid_spec=pltpu.PrefetchScalarGridSpec(
                num_scalar_prefetch=0,
                grid=(pl.cdiv(M, tm), pl.cdiv(N_pad, tn)),
                in_specs=[pl.BlockSpec((tm, K), lambda i, j: (i, 0)),
                          pl.BlockSpec((K, tn), lambda i, j: (0, j)),
                          pl.BlockSpec((1, tn), lambda i, j: (0, j))],
                out_specs=pl.BlockSpec((tm, tn), lambda i, j: (i, j))),
            compiler_params=pltpu.CompilerParams(
                dimension_semantics=("parallel", "parallel"),
                vmem_limit_bytes=_vmem_limit(fp)),
        )(x2d, w_p, b_p)

    return out if N_pad == N else out[:, :N]


# -----------------------------------------------------------------------------
# Fused 2-layer MLP: y = relu(x @ W1 + b1) @ W2 + b2 (hidden never hits HBM)
# -----------------------------------------------------------------------------
def mlp_pallas(x2d, w1, b1, w2, b2, *, compute_dtype=None):
    """Returns None when the fused footprint does not fit VMEM (caller falls
    back to two linear_pallas calls)."""
    M, K = x2d.shape
    _, H = w1.shape
    _, N = w2.shape
    out_dtype = x2d.dtype

    if compute_dtype is not None:
        w1 = w1.astype(compute_dtype)
        b1 = b1.astype(compute_dtype)
        w2 = w2.astype(compute_dtype)
        b2 = b2.astype(compute_dtype)
    cdtype = w1.dtype
    sub = _sublane(cdtype)

    H_pad = _round_up(H, 128)
    N_pad = _round_up(N, 128)
    w1_p = _pad2d(w1, K, H_pad)
    b1_p = _pad2d(b1.reshape(1, H), 1, H_pad)
    w2_p = _pad2d(w2, H_pad, N_pad)
    b2_p = _pad2d(b2.reshape(1, N), 1, N_pad)

    x_isz = x2d.dtype.itemsize
    c_isz = cdtype.itemsize
    o_isz = out_dtype.itemsize

    def fits(tm_):
        return _mlp_footprint(tm_, K, H_pad, N_pad, x_isz, c_isz, o_isz) <= _RESIDENT_BUDGET

    tm = _choose_tm(M, sub, fits)
    if tm is None:
        return None

    fp = _mlp_footprint(tm, K, H_pad, N_pad, x_isz, c_isz, o_isz)
    w_bytes = 2 * ((K + 1) * H_pad + (H_pad + 1) * N_pad) * c_isz
    kernel = functools.partial(_mlp_kernel, compute_dtype=compute_dtype)
    out = _resident_pallas_call(
        kernel,
        jax.ShapeDtypeStruct((M, N_pad), out_dtype),
        grid=(pl.cdiv(M, tm),),
        in_defs=[((tm, K), lambda i: (i, 0)),
                 ((K, H_pad), lambda i: (0, 0)),
                 ((1, H_pad), lambda i: (0, 0)),
                 ((H_pad, N_pad), lambda i: (0, 0)),
                 ((1, N_pad), lambda i: (0, 0))],
        out_def=((tm, N_pad), lambda i: (i, 0)),
        resident_idx=(1, 2, 3, 4),
        compiler_params=pltpu.CompilerParams(
            dimension_semantics=("parallel",),
            vmem_limit_bytes=_vmem_limit(fp)),
        args=(x2d, w1_p, b1_p, w2_p, b2_p),
        try_single_buffer=w_bytes > (8 << 20))
    return out if N_pad == N else out[:, :N]


# -----------------------------------------------------------------------------
# ProjectorMix in JAX: parameter setup + forward() dict semantics (glue); the
# linear hot path runs in the Pallas kernels above.
# -----------------------------------------------------------------------------
def _init_linear_params(key, d_in, d_out):
    # PyTorch nn.Linear default init: U(-1/sqrt(fan_in), 1/sqrt(fan_in))
    kw, kb = jax.random.split(key)
    bound = 1.0 / (float(d_in) ** 0.5)
    w = jax.random.uniform(kw, (d_in, d_out), jnp.float32, -bound, bound)
    b = jax.random.uniform(kb, (d_out,), jnp.float32, -bound, bound)
    return {"w": w, "b": b}


def _init_projector(key, d_in, d_out, nb_layers, whiten_params=None):
    if nb_layers == 1:
        if whiten_params is not None:
            # Matches torch: weight = whiten[0].T (our layout keeps [d_in, d_out]),
            # bias = whiten[1].squeeze() @ whiten[0].
            w = jnp.asarray(whiten_params[0], jnp.float32)
            mu = jnp.squeeze(jnp.asarray(whiten_params[1], jnp.float32))
            return [{"w": w, "b": mu @ w}]
        return [_init_linear_params(key, d_in, d_out)]
    k1, k2 = jax.random.split(key)
    # nn.Sequential(Linear(d_in, d_in), ReLU(), Linear(d_in, d_out))
    return [_init_linear_params(k1, d_in, d_in),
            _init_linear_params(k2, d_in, d_out)]


def _apply_projector(params, emb, compute_dtype=None):
    """emb: [..., D_in] -> [..., dim_out]; matmuls run in Pallas."""
    orig_shape = emb.shape
    d_in = orig_shape[-1]
    x2d = emb.reshape(-1, d_in)

    if len(params) == 1:
        y2d = linear_pallas(x2d, params[0]["w"], params[0]["b"],
                            compute_dtype=compute_dtype)
    else:
        y2d = mlp_pallas(x2d, params[0]["w"], params[0]["b"],
                         params[1]["w"], params[1]["b"],
                         compute_dtype=compute_dtype)
        if y2d is None:
            # Weights too large to keep both resident: two passes (hidden
            # activation round-trips HBM once).
            h = linear_pallas(x2d, params[0]["w"], params[0]["b"],
                              apply_relu=True, compute_dtype=compute_dtype)
            y2d = linear_pallas(h, params[1]["w"], params[1]["b"],
                                compute_dtype=compute_dtype)

    return y2d.reshape(orig_shape[:-1] + (y2d.shape[-1],))


class ProjectorMixPallas:
    def __init__(self, word_embedding_dimension, dim_out,
                 initialize_with_same_weights=False,
                 differenciate_q_vs_d=False, nb_layers=1,
                 freeze_query_one=True, from_s_emb=False,
                 whiten_params=None, compute_dtype=None, key=None):
        # TODO(synk): freeze_query_one (requires_grad) and save()/load() are
        # training/file-IO only and have no forward-pass equivalent here.
        self.word_embedding_dimension = word_embedding_dimension
        self.dim_out = dim_out
        self.differenciate_q_vs_d = differenciate_q_vs_d
        self.nb_layers = nb_layers
        # Note: on v5e, passing compute_dtype=jnp.bfloat16 is recommended for
        # throughput; default stays None (fp32) to preserve module semantics.
        self.compute_dtype = compute_dtype
        self.entity_to_pool = 'sentence_embedding' if from_s_emb else 'token_embeddings'
        key = jax.random.PRNGKey(0) if key is None else key
        kq, kd = jax.random.split(key)
        if differenciate_q_vs_d:
            self.query_projector = _init_projector(
                kq, word_embedding_dimension, dim_out, nb_layers, whiten_params)
            if initialize_with_same_weights:
                self.doc_projector = jax.tree_util.tree_map(
                    lambda x: x, self.query_projector)
            else:
                self.doc_projector = _init_projector(
                    kd, word_embedding_dimension, dim_out, nb_layers, whiten_params)
        else:
            self.projector = _init_projector(
                kq, word_embedding_dimension, dim_out, nb_layers, whiten_params)

    def get_sentence_embedding_dimension(self):
        return self.dim_out

    def forward(self, features):
        emb = features[self.entity_to_pool]
        if self.differenciate_q_vs_d:
            # 'is_query' is a static Python bool (as in the PyTorch module).
            if features['is_query']:
                emb = _apply_projector(self.query_projector, emb, self.compute_dtype)
            else:
                emb = _apply_projector(self.doc_projector, emb, self.compute_dtype)
        else:
            emb = _apply_projector(self.projector, emb, self.compute_dtype)
        features = dict(features)
        features[self.entity_to_pool] = emb
        return features


# -----------------------------------------------------------------------------
# Demo / correctness check.
# -----------------------------------------------------------------------------
if __name__ == "__main__":
    B, S, D_IN, D_OUT = 2, 8, 32, 16
    key = jax.random.PRNGKey(0)
    kx, kparams = jax.random.split(key)
    tok = jax.random.normal(kx, (B, S, D_IN), dtype=jnp.float32)

    # 1) Default config: single Linear projector, f32 compute.
    module = ProjectorMixPallas(D_IN, D_OUT, key=kparams)
    out = module.forward({"token_embeddings": tok})
    y = jax.block_until_ready(out["token_embeddings"])
    assert y.shape == (B, S, D_OUT), y.shape
    w, b = module.projector[0]["w"], module.projector[0]["b"]
    y_ref = tok.reshape(-1, D_IN) @ w + b
    assert jnp.allclose(y.reshape(-1, D_OUT), y_ref, atol=1e-4, rtol=1e-4)

    # 2) nb_layers=2: fused Linear->ReLU->Linear kernel (hidden stays in VMEM).
    module_mlp = ProjectorMixPallas(D_IN, D_OUT, nb_layers=2, key=kparams)
    out = module_mlp.forward({"token_embeddings": tok})
    y_mlp = jax.block_until_ready(out["token_embeddings"])
    assert y_mlp.shape == (B, S, D_OUT)
    p = module_mlp.projector
    h_ref = jnp.maximum(tok.reshape(-1, D_IN) @ p[0]["w"] + p[0]["b"], 0.0)
    y_mlp_ref = h_ref @ p[1]["w"] + p[1]["b"]
    assert jnp.allclose(y_mlp.reshape(-1, D_OUT), y_mlp_ref, atol=1e-3, rtol=1e-3)

    # 3) Query/doc-differentiated path.
    module_qd = ProjectorMixPallas(D_IN, D_OUT, differenciate_q_vs_d=True,
                                   key=kparams)
    out_q = module_qd.forward({"token_embeddings": tok, "is_query": True})
    out_d = module_qd.forward({"token_embeddings": tok, "is_query": False})
    jax.block_until_ready(out_q["token_embeddings"])
    jax.block_until_ready(out_d["token_embeddings"])
    assert out_q["token_embeddings"].shape == (B, S, D_OUT)
    assert out_d["token_embeddings"].shape == (B, S, D_OUT)

    # 4) bf16 compute path (operands cast in-kernel, f32 accumulation).
    module_bf16 = ProjectorMixPallas(D_IN, D_OUT, key=kparams,
                                     compute_dtype=jnp.bfloat16)
    out = module_bf16.forward({"token_embeddings": tok})
    y_bf16 = jax.block_until_ready(out["token_embeddings"])
    w, b = module_bf16.projector[0]["w"], module_bf16.projector[0]["b"]
    y_ref = tok.reshape(-1, D_IN) @ w + b
    assert jnp.allclose(y_bf16.reshape(-1, D_OUT), y_ref, atol=3e-2, rtol=3e-2)

    print("KERNEL_OK")
</pallas_src>

<mosaic_0001>
module attributes {stable_mosaic.version = 11 : i64} {
  func.func @_linear_kernel(%arg0: i32, %arg1: memref<16x32xf32, #tpu.memory_space<vmem>>, %arg2: memref<32x128xf32, #tpu.memory_space<vmem>>, %arg3: memref<1x128xf32, #tpu.memory_space<vmem>>, %arg4: memref<16x128xf32, #tpu.memory_space<vmem>>) attributes {dimension_semantics = [#tpu.dimension_semantics<parallel>], iteration_bounds = array<i64: 1>, scalar_prefetch = 0 : i64, scratch_operands = 0 : i64, tpu.core_type = #tpu.core_type<tc>, window_params = [{transform_indices = @transform_0, window_bounds = array<i64: 16, 32>}, {pipeline_mode = #tpu.pipeline_mode<synchronous>, transform_indices = @transform_1, window_bounds = array<i64: 32, 128>}, {pipeline_mode = #tpu.pipeline_mode<synchronous>, transform_indices = @transform_2, window_bounds = array<i64: 1, 128>}, {transform_indices = @transform_3, window_bounds = array<i64: 16, 128>}]} {
    %c0 = arith.constant 0 : index
    %c0_0 = arith.constant 0 : index
    %0 = vector.load %arg1[%c0, %c0_0] : memref<16x32xf32, #tpu.memory_space<vmem>>, vector<16x32xf32>
    %c0_1 = arith.constant 0 : index
    %c0_2 = arith.constant 0 : index
    %1 = vector.load %arg2[%c0_1, %c0_2] : memref<32x128xf32, #tpu.memory_space<vmem>>, vector<32x128xf32>
    %cst = arith.constant dense<0.000000e+00> : vector<16x128xf32>
    %2 = tpu.matmul %0, %1, %cst {dimension_numbers = #tpu.dot_dimension_numbers<[1], [0], [0], [1], [0, 0, 1, 1], [], []>} : vector<16x32xf32>, vector<32x128xf32>, vector<16x128xf32> -> vector<16x128xf32>
    %c0_3 = arith.constant 0 : index
    %c0_4 = arith.constant 0 : index
    %3 = vector.load %arg3[%c0_3, %c0_4] : memref<1x128xf32, #tpu.memory_space<vmem>>, vector<1x128xf32>
    %4 = vector.broadcast %3 : vector<1x128xf32> to vector<16x128xf32>
    %5 = arith.addf %2, %4 : vector<16x128xf32>
    %c0_5 = arith.constant 0 : index
    %c0_6 = arith.constant 0 : index
    %6 = vector.load %arg4[%c0_5, %c0_6] : memref<16x128xf32, #tpu.memory_space<vmem>>, vector<16x128xf32>
    tpu.vector_store %arg4[%c0_5, %c0_6], %5 {strides = array<i32>} : memref<16x128xf32, #tpu.memory_space<vmem>>, vector<16x128xf32>,
    return
  }
  func.func @transform_0(%arg0: i32) -> (i32, i32) {
    %c0_i32 = arith.constant 0 : i32
    %c0_i32_0 = arith.constant 0 : i32
    return %arg0, %c0_i32 : i32, i32
  }
  func.func @transform_1(%arg0: i32) -> (i32, i32) {
    %c0_i32 = arith.constant 0 : i32
    %c0_i32_0 = arith.constant 0 : i32
    %c0_i32_1 = arith.constant 0 : i32
    return %c0_i32, %c0_i32_0 : i32, i32
  }
  func.func @transform_2(%arg0: i32) -> (i32, i32) {
    %c0_i32 = arith.constant 0 : i32
    %c0_i32_0 = arith.constant 0 : i32
    %c0_i32_1 = arith.constant 0 : i32
    return %c0_i32, %c0_i32_0 : i32, i32
  }
  func.func @transform_3(%arg0: i32) -> (i32, i32) {
    %c0_i32 = arith.constant 0 : i32
    %c0_i32_0 = arith.constant 0 : i32
    return %arg0, %c0_i32 : i32, i32
  }
}

</mosaic_0001>

<bundles_post_ra>
// kernel: tpu_custom_call.1
= control target key start
LH: loop header
LB: loop body
LE: loop exit
PB: predicated region body
PF: predicated region fallthrough
CT: control target
= control target key end

     0   :  { %8 = vsyncpa [#allocation3], 0  ;;  %s297_s0 = inlined_call_operand.hbm [shape: f32[16,32], index: 0, kind: input, shape index: {}]   ;;  %s298_s1 = inlined_call_operand.hbm [shape: f32[32,128], index: 1, kind: input, shape index: {}]   ;;  %s299_s2 = inlined_call_operand.vmem [shape: f32[1,128], index: 2, kind: input, shape index: {}]   ;;  %s300_s3 = inlined_call_operand.hbm [shape: f32[16,128], index: 3, kind: output, shape index: {}]  }
   0x1   :  { %9 = vsyncpa [#allocation6], 0 }
   0x2   :  { %10 = vsyncpa [#allocation4], 0  ;;  %s249_s12 = smov [#allocation2]  }
   0x3   :  { %s16_s13 = sshll.u32 %s249_s12, 4  ;;  %s17_s13 = int_to_ptr.vmem [resolvable:$true] %s16_s13 }
   0x4   :  { %s191_s14 = scalar_lea.vmem %s17_s13, 256  ;;  %p196_p1 = scmp.lt.s32.totalorder %s17_s13, %s17_s13 }
   0x5   :  { %p192_p0 = scmp.ne.s32.totalorder %s17_s13, %s191_s14  ;;  %p197_p2 = scmp.lt.s32.totalorder %s191_s14, %s191_s14 }
   0x7   :  { %p198_p3 = por %p197_p2, %p196_p1 }
   0x9   :  { %p199_p4 = pnand %p198_p3, %p192_p0 }
   0xb   :  { %202 = shalt.err (!%p199_p4)
}
   0xc   :  { %s250_s15 = smov 128   ;;  %s251_s16 = smov 8  }
   0xd   :  { %22 = dma.hbm_to_vmem [thread:$0]  %s297_s0, 256, %s17_s13, [#allocation3], %s250_s15, %s250_s15, %s251_s16  }
   0xe   :  { %s252_s19 = smov [#allocation5]  }
   0xf   :  { %s28_s20 = sshll.u32 %s252_s19, 4  ;;  %s29_s20 = int_to_ptr.vmem [resolvable:$true] %s28_s20 }
  0x10   :  { %s211_s21 = scalar_lea.vmem %s29_s20, 512  ;;  %p216_p6 = scmp.lt.s32.totalorder %s29_s20, %s29_s20 }
  0x11   :  { %p212_p5 = scmp.ne.s32.totalorder %s29_s20, %s211_s21  ;;  %p217_p7 = scmp.lt.s32.totalorder %s211_s21, %s211_s21 }
  0x13   :  { %p218_p8 = por %p217_p7, %p216_p6 }
  0x15   :  { %p219_p9 = pnand %p218_p8, %p212_p5 }
  0x17   :  { %222 = shalt.err (!%p219_p9)
}
  0x18   :  { %34 = dma.hbm_to_vmem [thread:$0]  %s298_s1, 512, %s29_s20, [#allocation6], %s250_s15, %s250_s15, %s251_s16  }
  0x19   :  { %243 = dma.done.wait [#allocation3], 256  }
  0x1a   :  { %244 = vsyncadd [#allocation3], 4294967040 }
  0x1b   :  { %245 = dma.done.wait [#allocation6], 512  }
  0x1c   :  { %246 = vsyncadd [#allocation6], 4294966784  ;;  %vm56_vm0 = vcmask 261120   ;;  %v48_v0 = vld [vmem:[#allocation5 + $0x18] sm:$0xff]  ;;  %v47_v1 = vld [vmem:[#allocation5 + $0x10] sm:$0xff]  ;;  %s253_s24 = smov [#allocation7]  }
  0x1d   :  { %167 = vmatprep.subr.mxu0 %v48_v0  ;;  %v43_v2 = vld [vmem:[#allocation2] sm:$0xff]  ;;  %v46_v3 = vld [vmem:[#allocation5 + $0x8] sm:$0xff]  ;;  %v45_v4 = vld [vmem:[#allocation5] sm:$0xff]  ;;  %s145_s25 = sshll.u32 %s253_s24, 4  ;;  %s146_s25 = int_to_ptr.vmem [resolvable:$true] %s145_s25 }
  0x1e   :  { %168 = vmatpush3.msra.mxu0 %v48_v0  ;;  %175 = vmatprep.mubr.msk.f32.mxu0 %vm56_vm0, %v43_v2  ;;  %v44_v5 = vld [vmem:[#allocation2 + $0x8] sm:$0xff]  ;;  %v158_v6 = vld [vmem:[%s299_s2] ss:$0 sm:$0xff]  ;;  %s223_s26 = scalar_lea.vmem %s146_s25, 256  ;;  %p228_p11 = scmp.lt.s32.totalorder %s146_s25, %s146_s25 }
  0x1f   :  { %169 = vmatprep.subr.mxu0 %v47_v1  ;;  %p224_p10 = scmp.ne.s32.totalorder %s146_s25, %s223_s26  ;;  %p229_p12 = scmp.lt.s32.totalorder %s223_s26, %s223_s26 }
  0x20   :  { %170 = vmatpush3.msra.mxu0 %v47_v1 }
  0x21   :  { %171 = vmatprep.subr.mxu0 %v46_v3  ;;  %p230_p13 = por %p229_p12, %p228_p11 }
  0x22   :  { %172 = vmatpush3.msra.mxu0 %v46_v3 }
  0x23   :  { %173 = vmatprep.subr.mxu0 %v45_v4  ;;  %p231_p0 = pnand %p230_p13, %p224_p10 }
  0x24   :  { %174 = vmatpush3.msra.mxu0 %v45_v4 }
  0x25   :  { %176 = vmatmul.mubr.msk.f32.vlgmr.msra.gmra.mxu0 %vm56_vm0, %v44_v5 }
  0xe5   :  { %v177_v7 = vpop.f32.mrf.mxu0 }
  0xe6   :  { %v135_v8 = vadd.f32 %v177_v7, %v158_v6 }
  0xe7   :  { %v129_v9 = vpop.f32.mrf.mxu0 }
  0xe8   :  { %139 = vst [vmem:[#allocation7 + $0x8] sm:$0xff] %v135_v8  ;;  %v130_v10 = vadd.f32 %v158_v6, %v129_v9 }
  0xea   :  { %138 = vst [vmem:[#allocation7] sm:$0xff] %v130_v10 }
  0xeb   :  { %234 = shalt.err (!%p231_p0)
}
  0xec   :  { %151 = dma.vmem_to_hbm [thread:$0]  %s146_s25, 256, %s300_s3, [#allocation4], %s250_s15, %s250_s15, %s251_s16  }
  0xed   :  { %247 = dma.done.wait [#allocation4], 256  }
  0xee   :  { %248 = vsyncadd [#allocation4], 4294967040 }
  0xef   :  { %155 = vsyncpa [#allocation3], 1 }
  0xf0   :  { %156 = vsyncpa [#allocation6], 1 }
  0xf1   :  { %157 = vsyncpa [#allocation4], 1 }

</bundles_post_ra>
